<compile_context>
chip_gen: v5e
topology: v5e:2x2
jax: 0.10.0
libtpu: 0.0.40
codegen_flags: <defaults>
</compile_context>

<pallas_src>
import functools

import jax
import jax.numpy as jnp
from jax.experimental import pallas as pl
from jax.experimental.pallas import tpu as pltpu

_LANE = 128
_CHAN_GROUP = 64        # channel rows per accumulator group (bounds vreg pressure)
_UNROLL_LIMIT = 16      # static-unroll limit for the lane-block reduce loop
_MAX_BATCH_FOLD = 8     # max batch elements folded into one single-pass grid step


def _round_up(n, m):
    return (n + m - 1) // m * m


@functools.lru_cache(maxsize=None)
def _vmem_capacity_bytes():
    """Per-TensorCore VMEM capacity (128 MiB on v5e/v6e, 64 MiB on v7x)."""
    try:
        return int(pltpu.get_tpu_info().vmem_capacity_bytes)
    except Exception:
        return 64 << 20  # conservative (v7x) fallback


def _reduce_cols_into(read, n_chan, ncols, col, sum_ref, max_ref, accumulate):
    """Reduce columns [0, ncols) of a (n_chan, >=ncols) view into column `col`
    of the f32 scratch refs sum_ref / max_ref.

    `read(c0, g, start, width)` returns the f32 block view[c0:c0+g, start:start+width].
    The reduction is tiled over _CHAN_GROUP-channel groups (keeps the (g,128)
    accumulators in vregs) and over 128-lane blocks, plus one static ragged
    tail slice — no per-element masking anywhere.
    """
    nt = ncols // _LANE
    rem = ncols - nt * _LANE
    for c0 in range(0, n_chan, _CHAN_GROUP):
        g = min(_CHAN_GROUP, n_chan - c0)

        def body(t, carry, c0=c0, g=g):
            acc_s, acc_m = carry
            start = t * _LANE
            if not isinstance(t, int):
                start = pl.multiple_of(start, _LANE)
            blk = read(c0, g, start, _LANE)
            return acc_s + blk, jnp.maximum(acc_m, blk)

        if nt == 0:
            tail = read(c0, g, 0, rem)
            s_g = jnp.sum(tail, axis=-1, keepdims=True)
            m_g = jnp.max(tail, axis=-1, keepdims=True)
        else:
            init = (jnp.zeros((g, _LANE), jnp.float32),
                    jnp.full((g, _LANE), -jnp.inf, jnp.float32))
            if nt <= _UNROLL_LIMIT:
                acc_s, acc_m = init
                for t in range(nt):
                    acc_s, acc_m = body(t, (acc_s, acc_m))
            else:
                acc_s, acc_m = jax.lax.fori_loop(0, nt, body, init, unroll=8)
            s_g = jnp.sum(acc_s, axis=-1, keepdims=True)
            m_g = jnp.max(acc_m, axis=-1, keepdims=True)
            if rem:
                tail = read(c0, g, nt * _LANE, rem)
                s_g = s_g + jnp.sum(tail, axis=-1, keepdims=True)
                m_g = jnp.maximum(m_g, jnp.max(tail, axis=-1, keepdims=True))

        dst = (pl.ds(c0, g), pl.ds(col, 1))
        if accumulate:
            sum_ref[dst] = sum_ref[dst] + s_g
            max_ref[dst] = jnp.maximum(max_ref[dst], m_g)
        else:
            sum_ref[dst] = s_g
            max_ref[dst] = m_g


def _mlp_mask(sum_cb, max_cb, w1_ref, b1_ref, w2_ref, b2_ref, inv_hw):
    """Fused 1x1-conv MLP + sigmoid on pooled (C, Bt) columns.

    convs(avg) + convs(max) == W2 @ (W1 @ (avg+max) + 2*b1) + 2*b2 exactly (no
    nonlinearity between the convs); this halves the MXU work.
    """
    s = sum_cb * inv_hw + max_cb                                          # (C, Bt)
    h = jnp.dot(w1_ref[...], s, preferred_element_type=jnp.float32) + 2.0 * b1_ref[...]
    y = jnp.dot(w2_ref[...], h, preferred_element_type=jnp.float32) + 2.0 * b2_ref[...]
    return jax.nn.sigmoid(y)                                              # (C, Bt) f32


# ---------------------------- single-pass fused kernel ----------------------------
def _ca_fused_kernel(x_ref, w1_ref, b1_ref, w2_ref, b2_ref, o_ref, sum_sc, max_sc,
                     *, hw, bt):
    n_chan = w2_ref.shape[0]
    for i in range(bt):
        def read(c0, g, start, width, i=i):
            return x_ref[i, pl.ds(c0, g), pl.ds(start, width)].astype(jnp.float32)
        _reduce_cols_into(read, n_chan, hw, i, sum_sc, max_sc, accumulate=False)

    mask = _mlp_mask(sum_sc[...], max_sc[...], w1_ref, b1_ref, w2_ref, b2_ref, 1.0 / hw)

    # Resize of a 1x1 mask == lane-broadcast; multiply in the input dtype so no
    # f32 copy of the slab is materialized.
    for i in range(bt):
        o_ref[i] = x_ref[i] * mask[:, i:i + 1].astype(o_ref.dtype)


# ------------------------------ two-pass fallback ---------------------------------
def _ca_pool_mlp_kernel(x_ref, w1_ref, b1_ref, w2_ref, b2_ref, mask_ref,
                        sum_sc, max_sc, *, hw, chunk, nchunks):
    n_chan = w2_ref.shape[0]
    k = pl.program_id(1)

    @pl.when(k == 0)
    def _init():
        sum_sc[...] = jnp.zeros_like(sum_sc)
        max_sc[...] = jnp.full_like(max_sc, -jnp.inf)

    def read(c0, g, start, width):
        return x_ref[pl.ds(c0, g), pl.ds(start, width)].astype(jnp.float32)

    last_valid = hw - (nchunks - 1) * chunk          # in (0, chunk]
    if last_valid == chunk:
        _reduce_cols_into(read, n_chan, chunk, 0, sum_sc, max_sc, accumulate=True)
    else:
        # Only the final chunk straddles HW: give it its own statically-sized
        # reduction instead of masking every block of every chunk (the block's
        # out-of-bounds lanes contain unspecified data and are never read).
        @pl.when(k < nchunks - 1)
        def _full():
            _reduce_cols_into(read, n_chan, chunk, 0, sum_sc, max_sc, accumulate=True)

        @pl.when(k == nchunks - 1)
        def _ragged():
            _reduce_cols_into(read, n_chan, last_valid, 0, sum_sc, max_sc,
                              accumulate=True)

    @pl.when(k == nchunks - 1)
    def _finish():
        mask_ref[...] = _mlp_mask(sum_sc[...], max_sc[...], w1_ref, b1_ref,
                                  w2_ref, b2_ref, 1.0 / hw).astype(mask_ref.dtype)


def _ca_apply_kernel(x_ref, mask_ref, o_ref):
    o_ref[...] = x_ref[...] * mask_ref[...].astype(o_ref.dtype)


# ---------------------------------- wrapper ----------------------------------------
def _pick_chunk(rows_padded, itemsize, hw, per_buffer_budget):
    cols = per_buffer_budget // max(1, rows_padded * itemsize)
    cols = max(_LANE, cols // _LANE * _LANE)
    return int(min(cols, _round_up(hw, _LANE)))


@functools.partial(jax.jit, static_argnames=("force_two_pass", "chunk_cols"))
def channel_attention(x, w1, b1, w2, b2, *, force_two_pass=False, chunk_cols=None):
    """x: (B, C, H, W).  w1: (M, C) (Conv2d(C,M,1) weight), b1: (M,),
    w2: (C, M) (Conv2d(M,C,1) weight), b2: (C,).
    `chunk_cols` (static, multiple of 128) overrides the two-pass chunk width
    (testing hook)."""
    B, C, H, W = x.shape
    M = w1.shape[0]
    HW = H * W
    itemsize = jnp.dtype(x.dtype).itemsize

    w1f = w1.astype(jnp.float32)
    w2f = w2.astype(jnp.float32)
    b1c = b1.reshape(M, 1).astype(jnp.float32)
    b2c = b2.reshape(C, 1).astype(jnp.float32)
    x_flat = x.reshape(B, C, HW)

    vmem_cap = _vmem_capacity_bytes()
    vmem_ceiling = vmem_cap - (8 << 20)              # never request more than this
    c_pad = _round_up(C, 8)
    hw_pad = _round_up(HW, _LANE)
    slab_bytes = c_pad * hw_pad * itemsize           # VMEM footprint of one (C,HW) block
    w_bytes = 2 * (2 * M * C + M + C) * 4            # weights (assume double-buffered)
    scratch_bytes = 2 * c_pad * _LANE * 4            # (C, Bt) f32 x2, tiled to 128 lanes

    # Single pass keeps double-buffered in+out per-batch slabs resident:
    # ~40 MiB budget on v7x (64 MiB VMEM), ~104 MiB on v5e/v6e (128 MiB VMEM).
    single_pass_limit = vmem_cap - (24 << 20)
    two_pass = force_two_pass or (4 * slab_bytes + w_bytes > single_pass_limit)

    if not two_pass:
        # Fold a few batch elements per grid step when slabs are tiny: amortizes
        # the ~0.35 us/step pipeline overhead and widens the MLP to (M,C)@(C,bt).
        bt = 1
        fold_budget = min(single_pass_limit, 16 << 20)
        for d in range(1, min(B, _MAX_BATCH_FOLD) + 1):
            if B % d == 0 and 4 * d * slab_bytes + w_bytes <= fold_budget:
                bt = d
        vmem_need = 4 * bt * slab_bytes + w_bytes + scratch_bytes

        out = pl.pallas_call(
            functools.partial(_ca_fused_kernel, hw=HW, bt=bt),
            out_shape=jax.ShapeDtypeStruct((B, C, HW), x.dtype),
            grid_spec=pltpu.PrefetchScalarGridSpec(
                num_scalar_prefetch=0,
                grid=(B // bt,),
                in_specs=[
                    pl.BlockSpec((bt, C, HW), lambda b: (b, 0, 0)),
                    pl.BlockSpec((M, C), lambda b: (0, 0)),
                    pl.BlockSpec((M, 1), lambda b: (0, 0)),
                    pl.BlockSpec((C, M), lambda b: (0, 0)),
                    pl.BlockSpec((C, 1), lambda b: (0, 0)),
                ],
                out_specs=pl.BlockSpec((bt, C, HW), lambda b: (b, 0, 0)),
                scratch_shapes=[pltpu.VMEM((C, bt), jnp.float32),
                                pltpu.VMEM((C, bt), jnp.float32)],
            ),
            compiler_params=pltpu.CompilerParams(
                dimension_semantics=("parallel",),
                vmem_limit_bytes=int(min(vmem_ceiling, vmem_need + (16 << 20))),
            ),
            cost_estimate=pl.CostEstimate(
                flops=3 * B * C * HW + 8 * B * M * C,
                transcendentals=B * C,
                bytes_accessed=(2 * B * C * HW + 2 * M * C + M + C) * itemsize,
            ),
        )(x_flat, w1f, b1c, w2f, b2c)
        return out.reshape(B, C, H, W)

    # ---- two-pass fallback: pool+MLP -> (B, C, 1) mask, then HW-chunked apply ----
    if chunk_cols is not None:
        pool_chunk = min(max(_LANE, int(chunk_cols) // _LANE * _LANE),
                         _round_up(HW, _LANE))
        apply_chunk = pool_chunk
    else:
        # Pool only double-buffers its input (output is (C,1)); apply double-
        # buffers input + output.  Target >= 1 MiB DMA blocks for ~85% of roofline.
        pool_chunk = _pick_chunk(c_pad, itemsize, HW, per_buffer_budget=8 << 20)
        apply_chunk = _pick_chunk(c_pad, itemsize, HW, per_buffer_budget=4 << 20)
    n_pool = pl.cdiv(HW, pool_chunk)
    n_apply = pl.cdiv(HW, apply_chunk)

    pool_need = 2 * c_pad * pool_chunk * itemsize + w_bytes + scratch_bytes
    mask = pl.pallas_call(
        functools.partial(_ca_pool_mlp_kernel, hw=HW, chunk=pool_chunk, nchunks=n_pool),
        out_shape=jax.ShapeDtypeStruct((B, C, 1), jnp.float32),
        grid_spec=pltpu.PrefetchScalarGridSpec(
            num_scalar_prefetch=0,
            grid=(B, n_pool),
            in_specs=[
                pl.BlockSpec((None, C, pool_chunk), lambda b, k: (b, 0, k)),
                pl.BlockSpec((M, C), lambda b, k: (0, 0)),
                pl.BlockSpec((M, 1), lambda b, k: (0, 0)),
                pl.BlockSpec((C, M), lambda b, k: (0, 0)),
                pl.BlockSpec((C, 1), lambda b, k: (0, 0)),
            ],
            out_specs=pl.BlockSpec((None, C, 1), lambda b, k: (b, 0, 0)),
            scratch_shapes=[pltpu.VMEM((C, 1), jnp.float32),
                            pltpu.VMEM((C, 1), jnp.float32)],
        ),
        compiler_params=pltpu.CompilerParams(
            dimension_semantics=("parallel", "arbitrary"),
            vmem_limit_bytes=int(min(vmem_ceiling, pool_need + (16 << 20))),
        ),
        cost_estimate=pl.CostEstimate(
            flops=2 * B * C * HW + 8 * B * M * C,
            transcendentals=B * C,
            bytes_accessed=(B * C * HW + 2 * M * C + M + C) * itemsize + B * C * 4,
        ),
    )(x_flat, w1f, b1c, w2f, b2c)

    apply_need = 4 * c_pad * apply_chunk * itemsize + c_pad * _LANE * 4
    out = pl.pallas_call(
        _ca_apply_kernel,
        out_shape=jax.ShapeDtypeStruct((B, C, HW), x.dtype),
        grid_spec=pltpu.PrefetchScalarGridSpec(
            num_scalar_prefetch=0,
            grid=(B, n_apply),
            in_specs=[
                pl.BlockSpec((None, C, apply_chunk), lambda b, k: (b, 0, k)),
                pl.BlockSpec((None, C, 1), lambda b, k: (b, 0, 0)),
            ],
            out_specs=pl.BlockSpec((None, C, apply_chunk), lambda b, k: (b, 0, k)),
        ),
        compiler_params=pltpu.CompilerParams(
            dimension_semantics=("parallel", "parallel"),
            vmem_limit_bytes=int(min(vmem_ceiling, apply_need + (16 << 20))),
        ),
        cost_estimate=pl.CostEstimate(
            flops=B * C * HW,
            transcendentals=0,
            bytes_accessed=2 * B * C * HW * itemsize + B * C * 4,
        ),
    )(x_flat, mask)
    return out.reshape(B, C, H, W)


def channel_attention_ref(x, w1, b1, w2, b2):
    """Pure-JAX reference mirroring the PyTorch module."""
    avg = jnp.mean(x, axis=(2, 3))                       # (B, C)
    mx = jnp.max(x, axis=(2, 3))                         # (B, C)

    def convs(p):
        h = p @ w1.T + b1
        return h @ w2.T + b2

    mask = jax.nn.sigmoid(convs(avg) + convs(mx))        # (B, C)
    return x * mask[:, :, None, None]


if __name__ == "__main__":
    root = jax.random.PRNGKey(0)

    def make_case(key, B, C, M, H, W):
        kx, kw1, kb1, kw2, kb2 = jax.random.split(key, 5)
        x = jax.random.normal(kx, (B, C, H, W), dtype=jnp.float32)
        w1 = jax.random.normal(kw1, (M, C), dtype=jnp.float32) * 0.1
        b1 = jax.random.normal(kb1, (M,), dtype=jnp.float32) * 0.1
        w2 = jax.random.normal(kw2, (C, M), dtype=jnp.float32) * 0.1
        b2 = jax.random.normal(kb2, (C,), dtype=jnp.float32) * 0.1
        return x, w1, b1, w2, b2

    cases = [
        # (B, C, M, H, W, force_two_pass, chunk_cols)
        (2, 8, 4, 16, 16, False, None),    # single-pass, batch-folded, aligned HW=256
        (2, 8, 4, 10, 10, False, None),    # single-pass, ragged HW=100 (no pad/slice)
        (1, 160, 8, 24, 24, False, None),  # single-pass, multiple 64-channel groups
        (2, 8, 4, 16, 16, True, 128),      # two-pass, 2 aligned chunks
        (2, 8, 4, 10, 10, True, 128),      # two-pass, single ragged chunk
        (1, 16, 8, 20, 20, True, 128),     # two-pass, 4 chunks, ragged final chunk
    ]
    keys = jax.random.split(root, len(cases))
    for kc, (B, C, M, H, W, two_pass, chunk_cols) in zip(keys, cases):
        x, w1, b1, w2, b2 = make_case(kc, B, C, M, H, W)
        out = channel_attention(x, w1, b1, w2, b2,
                                force_two_pass=two_pass, chunk_cols=chunk_cols)
        jax.block_until_ready(out)
        ref = channel_attention_ref(x, w1, b1, w2, b2)
        assert out.shape == x.shape and out.dtype == x.dtype
        assert jnp.allclose(out, ref, atol=1e-5, rtol=1e-5), (
            f"mismatch vs reference (B={B},C={C},H={H},W={W},two_pass={two_pass},"
            f"chunk={chunk_cols})")

    print("KERNEL_OK")
</pallas_src>

<mosaic_0001>
module attributes {stable_mosaic.version = 11 : i64} {
  func.func @_ca_fused_kernel(%arg0: i32, %arg1: memref<2x8x256xf32, #tpu.memory_space<vmem>>, %arg2: memref<4x8xf32, #tpu.memory_space<vmem>>, %arg3: memref<4x1xf32, #tpu.memory_space<vmem>>, %arg4: memref<8x4xf32, #tpu.memory_space<vmem>>, %arg5: memref<8x1xf32, #tpu.memory_space<vmem>>, %arg6: memref<2x8x256xf32, #tpu.memory_space<vmem>>, %arg7: memref<8x2xf32, #tpu.memory_space<vmem>>, %arg8: memref<8x2xf32, #tpu.memory_space<vmem>>) attributes {dimension_semantics = [#tpu.dimension_semantics<parallel>], iteration_bounds = array<i64: 1>, scalar_prefetch = 0 : i64, scratch_operands = 2 : i64, tpu.core_type = #tpu.core_type<tc>, window_params = [{transform_indices = @transform_0, window_bounds = array<i64: 2, 8, 256>}, {pipeline_mode = #tpu.pipeline_mode<synchronous>, transform_indices = @transform_1, window_bounds = array<i64: 4, 8>}, {pipeline_mode = #tpu.pipeline_mode<synchronous>, transform_indices = @transform_2, window_bounds = array<i64: 4, 1>}, {pipeline_mode = #tpu.pipeline_mode<synchronous>, transform_indices = @transform_3, window_bounds = array<i64: 8, 4>}, {pipeline_mode = #tpu.pipeline_mode<synchronous>, transform_indices = @transform_4, window_bounds = array<i64: 8, 1>}, {transform_indices = @transform_5, window_bounds = array<i64: 2, 8, 256>}]} {
    %cst = arith.constant 0.000000e+00 : f32
    %0 = vector.broadcast %cst : f32 to vector<8x128xf32>
    %cst_0 = arith.constant 0xFF800000 : f32
    %1 = vector.broadcast %cst_0 : f32 to vector<8x128xf32>
    %c0 = arith.constant 0 : index
    %c0_1 = arith.constant 0 : index
    %c0_2 = arith.constant 0 : index
    %2 = vector.load %arg1[%c0, %c0_1, %c0_2] : memref<2x8x256xf32, #tpu.memory_space<vmem>>, vector<1x8x128xf32>
    %3 = vector.shape_cast %2 : vector<1x8x128xf32> to vector<8x128xf32>
    %4 = arith.addf %0, %3 : vector<8x128xf32>
    %5 = arith.maximumf %1, %3 : vector<8x128xf32>
    %c0_3 = arith.constant 0 : index
    %c0_4 = arith.constant 0 : index
    %c128 = arith.constant 128 : index
    %6 = vector.load %arg1[%c0_3, %c0_4, %c128] : memref<2x8x256xf32, #tpu.memory_space<vmem>>, vector<1x8x128xf32>
    %7 = vector.shape_cast %6 : vector<1x8x128xf32> to vector<8x128xf32>
    %8 = arith.addf %4, %7 : vector<8x128xf32>
    %9 = arith.maximumf %5, %7 : vector<8x128xf32>
    %cst_5 = arith.constant dense<0.000000e+00> : vector<8xf32>
    %10 = vector.multi_reduction <add>, %8, %cst_5 [1] : vector<8x128xf32> to vector<8xf32>
    %11 = vector.shape_cast %10 : vector<8xf32> to vector<8x1xf32>
    %cst_6 = arith.constant dense<0xFF800000> : vector<8xf32>
    %12 = vector.multi_reduction <maximumf>, %9, %cst_6 [1] : vector<8x128xf32> to vector<8xf32>
    %13 = vector.shape_cast %12 : vector<8xf32> to vector<8x1xf32>
    %c0_7 = arith.constant 0 : index
    %c0_8 = arith.constant 0 : index
    %14 = vector.load %arg7[%c0_7, %c0_8] : memref<8x2xf32, #tpu.memory_space<vmem>>, vector<8x1xf32>
    tpu.vector_store %arg7[%c0_7, %c0_8], %11 {strides = array<i32>} : memref<8x2xf32, #tpu.memory_space<vmem>>, vector<8x1xf32>,
    %c0_9 = arith.constant 0 : index
    %c0_10 = arith.constant 0 : index
    %15 = vector.load %arg8[%c0_9, %c0_10] : memref<8x2xf32, #tpu.memory_space<vmem>>, vector<8x1xf32>
    tpu.vector_store %arg8[%c0_9, %c0_10], %13 {strides = array<i32>} : memref<8x2xf32, #tpu.memory_space<vmem>>, vector<8x1xf32>,
    %cst_11 = arith.constant 0.000000e+00 : f32
    %16 = vector.broadcast %cst_11 : f32 to vector<8x128xf32>
    %cst_12 = arith.constant 0xFF800000 : f32
    %17 = vector.broadcast %cst_12 : f32 to vector<8x128xf32>
    %c1 = arith.constant 1 : index
    %c0_13 = arith.constant 0 : index
    %c0_14 = arith.constant 0 : index
    %18 = vector.load %arg1[%c1, %c0_13, %c0_14] : memref<2x8x256xf32, #tpu.memory_space<vmem>>, vector<1x8x128xf32>
    %19 = vector.shape_cast %18 : vector<1x8x128xf32> to vector<8x128xf32>
    %20 = arith.addf %16, %19 : vector<8x128xf32>
    %21 = arith.maximumf %17, %19 : vector<8x128xf32>
    %c1_15 = arith.constant 1 : index
    %c0_16 = arith.constant 0 : index
    %c128_17 = arith.constant 128 : index
    %22 = vector.load %arg1[%c1_15, %c0_16, %c128_17] : memref<2x8x256xf32, #tpu.memory_space<vmem>>, vector<1x8x128xf32>
    %23 = vector.shape_cast %22 : vector<1x8x128xf32> to vector<8x128xf32>
    %24 = arith.addf %20, %23 : vector<8x128xf32>
    %25 = arith.maximumf %21, %23 : vector<8x128xf32>
    %cst_18 = arith.constant dense<0.000000e+00> : vector<8xf32>
    %26 = vector.multi_reduction <add>, %24, %cst_18 [1] : vector<8x128xf32> to vector<8xf32>
    %27 = vector.shape_cast %26 : vector<8xf32> to vector<8x1xf32>
    %cst_19 = arith.constant dense<0xFF800000> : vector<8xf32>
    %28 = vector.multi_reduction <maximumf>, %25, %cst_19 [1] : vector<8x128xf32> to vector<8xf32>
    %29 = vector.shape_cast %28 : vector<8xf32> to vector<8x1xf32>
    %c0_20 = arith.constant 0 : index
    %c1_21 = arith.constant 1 : index
    %30 = vector.load %arg7[%c0_20, %c1_21] : memref<8x2xf32, #tpu.memory_space<vmem>>, vector<8x1xf32>
    tpu.vector_store %arg7[%c0_20, %c1_21], %27 {strides = array<i32>} : memref<8x2xf32, #tpu.memory_space<vmem>>, vector<8x1xf32>,
    %c0_22 = arith.constant 0 : index
    %c1_23 = arith.constant 1 : index
    %31 = vector.load %arg8[%c0_22, %c1_23] : memref<8x2xf32, #tpu.memory_space<vmem>>, vector<8x1xf32>
    tpu.vector_store %arg8[%c0_22, %c1_23], %29 {strides = array<i32>} : memref<8x2xf32, #tpu.memory_space<vmem>>, vector<8x1xf32>,
    %c0_24 = arith.constant 0 : index
    %c0_25 = arith.constant 0 : index
    %32 = vector.load %arg7[%c0_24, %c0_25] : memref<8x2xf32, #tpu.memory_space<vmem>>, vector<8x2xf32>
    %c0_26 = arith.constant 0 : index
    %c0_27 = arith.constant 0 : index
    %33 = vector.load %arg8[%c0_26, %c0_27] : memref<8x2xf32, #tpu.memory_space<vmem>>, vector<8x2xf32>
    %cst_28 = arith.constant 3.906250e-03 : f32
    %34 = vector.broadcast %cst_28 : f32 to vector<8x2xf32>
    %35 = arith.mulf %32, %34 : vector<8x2xf32>
    %36 = arith.addf %35, %33 : vector<8x2xf32>
    %c0_29 = arith.constant 0 : index
    %c0_30 = arith.constant 0 : index
    %37 = vector.load %arg2[%c0_29, %c0_30] : memref<4x8xf32, #tpu.memory_space<vmem>>, vector<4x8xf32>
    %cst_31 = arith.constant dense<0.000000e+00> : vector<4x2xf32>
    %38 = tpu.matmul %37, %36, %cst_31 {dimension_numbers = #tpu.dot_dimension_numbers<[1], [0], [0], [1], [0, 0, 1, 1], [], []>} : vector<4x8xf32>, vector<8x2xf32>, vector<4x2xf32> -> vector<4x2xf32>
    %c0_32 = arith.constant 0 : index
    %c0_33 = arith.constant 0 : index
    %39 = vector.load %arg3[%c0_32, %c0_33] : memref<4x1xf32, #tpu.memory_space<vmem>>, vector<4x1xf32>
    %cst_34 = arith.constant 2.000000e+00 : f32
    %40 = vector.broadcast %cst_34 : f32 to vector<4x1xf32>
    %41 = arith.mulf %40, %39 : vector<4x1xf32>
    %42 = vector.broadcast %41 : vector<4x1xf32> to vector<4x2xf32>
    %43 = arith.addf %38, %42 : vector<4x2xf32>
    %c0_35 = arith.constant 0 : index
    %c0_36 = arith.constant 0 : index
    %44 = vector.load %arg4[%c0_35, %c0_36] : memref<8x4xf32, #tpu.memory_space<vmem>>, vector<8x4xf32>
    %cst_37 = arith.constant dense<0.000000e+00> : vector<8x2xf32>
    %45 = tpu.matmul %44, %43, %cst_37 {dimension_numbers = #tpu.dot_dimension_numbers<[1], [0], [0], [1], [0, 0, 1, 1], [], []>} : vector<8x4xf32>, vector<4x2xf32>, vector<8x2xf32> -> vector<8x2xf32>
    %c0_38 = arith.constant 0 : index
    %c0_39 = arith.constant 0 : index
    %46 = vector.load %arg5[%c0_38, %c0_39] : memref<8x1xf32, #tpu.memory_space<vmem>>, vector<8x1xf32>
    %cst_40 = arith.constant 2.000000e+00 : f32
    %47 = vector.broadcast %cst_40 : f32 to vector<8x1xf32>
    %48 = arith.mulf %47, %46 : vector<8x1xf32>
    %49 = vector.broadcast %48 : vector<8x1xf32> to vector<8x2xf32>
    %50 = arith.addf %45, %49 : vector<8x2xf32>
    %51 = arith.negf %50 : vector<8x2xf32>
    %52 = math.exp %51 : vector<8x2xf32>
    %cst_41 = arith.constant 1.000000e+00 : f32
    %53 = vector.broadcast %cst_41 : f32 to vector<8x2xf32>
    %54 = arith.addf %53, %52 : vector<8x2xf32>
    %55 = arith.divf %53, %54 : vector<8x2xf32>
    %c0_42 = arith.constant 0 : index
    %c0_43 = arith.constant 0 : index
    %c0_44 = arith.constant 0 : index
    %56 = vector.load %arg1[%c0_42, %c0_43, %c0_44] : memref<2x8x256xf32, #tpu.memory_space<vmem>>, vector<1x8x256xf32>
    %57 = vector.shape_cast %56 : vector<1x8x256xf32> to vector<8x256xf32>
    %58 = vector.extract_strided_slice %55 {offsets = [0, 0], sizes = [8, 1], strides = [1, 1]} : vector<8x2xf32> to vector<8x1xf32>
    %59 = vector.broadcast %58 : vector<8x1xf32> to vector<8x256xf32>
    %60 = arith.mulf %57, %59 : vector<8x256xf32>
    %c0_45 = arith.constant 0 : index
    %c0_46 = arith.constant 0 : index
    %c0_47 = arith.constant 0 : index
    %61 = vector.load %arg6[%c0_45, %c0_46, %c0_47] : memref<2x8x256xf32, #tpu.memory_space<vmem>>, vector<1x8x256xf32>
    %62 = vector.shape_cast %61 : vector<1x8x256xf32> to vector<8x256xf32>
    %63 = vector.shape_cast %60 : vector<8x256xf32> to vector<1x8x256xf32>
    tpu.vector_store %arg6[%c0_45, %c0_46, %c0_47], %63 {strides = array<i32>} : memref<2x8x256xf32, #tpu.memory_space<vmem>>, vector<1x8x256xf32>,
    %c1_48 = arith.constant 1 : index
    %c0_49 = arith.constant 0 : index
    %c0_50 = arith.constant 0 : index
    %64 = vector.load %arg1[%c1_48, %c0_49, %c0_50] : memref<2x8x256xf32, #tpu.memory_space<vmem>>, vector<1x8x256xf32>
    %65 = vector.shape_cast %64 : vector<1x8x256xf32> to vector<8x256xf32>
    %66 = vector.extract_strided_slice %55 {offsets = [0, 1], sizes = [8, 1], strides = [1, 1]} : vector<8x2xf32> to vector<8x1xf32>
    %67 = vector.broadcast %66 : vector<8x1xf32> to vector<8x256xf32>
    %68 = arith.mulf %65, %67 : vector<8x256xf32>
    %c1_51 = arith.constant 1 : index
    %c0_52 = arith.constant 0 : index
    %c0_53 = arith.constant 0 : index
    %69 = vector.load %arg6[%c1_51, %c0_52, %c0_53] : memref<2x8x256xf32, #tpu.memory_space<vmem>>, vector<1x8x256xf32>
    %70 = vector.shape_cast %69 : vector<1x8x256xf32> to vector<8x256xf32>
    %71 = vector.shape_cast %68 : vector<8x256xf32> to vector<1x8x256xf32>
    tpu.vector_store %arg6[%c1_51, %c0_52, %c0_53], %71 {strides = array<i32>} : memref<2x8x256xf32, #tpu.memory_space<vmem>>, vector<1x8x256xf32>,
    return
  }
  func.func @transform_0(%arg0: i32) -> (i32, i32, i32) {
    %c0_i32 = arith.constant 0 : i32
    %c0_i32_0 = arith.constant 0 : i32
    %c0_i32_1 = arith.constant 0 : i32
    return %arg0, %c0_i32, %c0_i32_0 : i32, i32, i32
  }
  func.func @transform_1(%arg0: i32) -> (i32, i32) {
    %c0_i32 = arith.constant 0 : i32
    %c0_i32_0 = arith.constant 0 : i32
    %c0_i32_1 = arith.constant 0 : i32
    return %c0_i32, %c0_i32_0 : i32, i32
  }
  func.func @transform_2(%arg0: i32) -> (i32, i32) {
    %c0_i32 = arith.constant 0 : i32
    %c0_i32_0 = arith.constant 0 : i32
    %c0_i32_1 = arith.constant 0 : i32
    return %c0_i32, %c0_i32_0 : i32, i32
  }
  func.func @transform_3(%arg0: i32) -> (i32, i32) {
    %c0_i32 = arith.constant 0 : i32
    %c0_i32_0 = arith.constant 0 : i32
    %c0_i32_1 = arith.constant 0 : i32
    return %c0_i32, %c0_i32_0 : i32, i32
  }
  func.func @transform_4(%arg0: i32) -> (i32, i32) {
    %c0_i32 = arith.constant 0 : i32
    %c0_i32_0 = arith.constant 0 : i32
    %c0_i32_1 = arith.constant 0 : i32
    return %c0_i32, %c0_i32_0 : i32, i32
  }
  func.func @transform_5(%arg0: i32) -> (i32, i32, i32) {
    %c0_i32 = arith.constant 0 : i32
    %c0_i32_0 = arith.constant 0 : i32
    %c0_i32_1 = arith.constant 0 : i32
    return %arg0, %c0_i32, %c0_i32_0 : i32, i32, i32
  }
}

</mosaic_0001>

<bundles_post_ra>
// kernel: channel_attention.1
= control target key start
LH: loop header
LB: loop body
LE: loop exit
PB: predicated region body
PF: predicated region fallthrough
CT: control target
= control target key end

     0   :  { %v182_v9 = vmov 0   ;;  %vm29_vm0 = vcmask 7168   ;;  %vm42_vm1 = vcmask 15368   ;;  %vm57_vm2 = vcmask 64512   ;;  %s270_s0 = inlined_call_operand.vmem [shape: f32[2,8,256], index: 0, kind: input, shape index: {}]   ;;  %s271_s2 = inlined_call_operand.vmem [shape: f32[4,1], index: 2, kind: input, shape index: {}]   ;;  %s272_s4 = inlined_call_operand.vmem [shape: f32[8,1], index: 4, kind: input, shape index: {}]   ;;  %s273_s1 = inlined_call_operand.vmem [shape: f32[4,8], index: 1, kind: input, shape index: {}]   ;;  %s274_s3 = inlined_call_operand.vmem [shape: f32[8,4], index: 3, kind: input, shape index: {}]   ;;  %s275_s5 = inlined_call_operand.vmem [shape: f32[2,8,256], index: 5, kind: output, shape index: {}]  }
   0x1   :  { %v217_v0 = vld [vmem:[%s270_s0] sm:$0xff]  ;;  %v222_v1 = vld [vmem:[%s270_s0 + $0x8] sm:$0xff]  ;;  %v231_v4 = vld [vmem:[%s270_s0 + $0x10] sm:$0xff]  ;;  %174 = vset.pattern.permute.xlu2 %v182_v9  ;;  %175 = vset.pattern.permute.xlu0 %v182_v9  ;;  %vm93_vm3 = vcmask 1043456   ;;  %vm89_vm4 = vcmask 31744   ;;  %v183_v26 = vmov 1  }
   0x2   :  { %v23_v2 = vadd.f32 %v222_v1, %v217_v0  ;;  %v24_v3 = vmax.f32 %v217_v0, %v222_v1  ;;  %v236_v5 = vld [vmem:[%s270_s0 + $0x18] sm:$0xff]  ;;  %v50_v8 = vld [vmem:[%s271_s2] sm:$0xf]  ;;  %176 = vset.pattern.permute.xlu1 %v183_v26 }
   0x3   :  { %v36_v6 = vadd.f32 %v236_v5, %v231_v4  ;;  %v37_v7 = vmax.f32 %v231_v4, %v236_v5  ;;  %v51_v10 = vmul.f32 2.0, %v50_v8  ;;  %v82_v11 = vld [vmem:[%s272_s4] sm:$0xff] }
   0x4   :  { %25 = vadd.xlane.f32.xlu0 %v23_v2  ;;  %27 = vmax.xlane.f32.xlu1 %v24_v3  ;;  %v83_v12 = vmul.f32 2.0, %v82_v11  ;;  %v49_v21 = vld [vmem:[%s273_s1] sm:$0xf] }
   0x5   :  { %54 = vperm.xlu2 %174, %v51_v10   ;;  %v81_v25 = vld [vmem:[%s274_s3] sm:$0xff] }
   0xc   :  { %38 = vadd.xlane.f32.xlu0 %v36_v6  ;;  %40 = vmax.xlane.f32.xlu1 %v37_v7 }
   0xd   :  { %86 = vperm.xlu2 %174, %v83_v12  }
  0x5f   :  { %v55_v22 = vpop.permute.xlu2 %54 }
  0x67   :  { %v87_v27 = vpop.permute.xlu2 %86 }
  0x77   :  { %v26_v13 = vpop.xlane.xlu0 %25  ;;  %v28_v14 = vpop.xlane.xlu1 %27 }
  0x78   :  { %30 = vst.msk [vmem:[#allocation2] sm:$0xff] %vm29_vm0, %v26_v13 }
  0x79   :  { %31 = vst.msk [vmem:[#allocation3] sm:$0xff] %vm29_vm0, %v28_v14 }
  0x7f   :  { %v39_v15 = vpop.xlane.xlu0 %38  ;;  %v41_v16 = vpop.xlane.xlu1 %40 }
  0x80   :  { %43 = vst.msk [vmem:[#allocation2] sm:$0xff] %vm42_vm1, %v39_v15 }
  0x81   :  { %44 = vst.msk [vmem:[#allocation3] sm:$0xff] %vm42_vm1, %v41_v16 }
  0x87   :  { %v45_v17 = vld [vmem:[#allocation2] sm:$0xff] }
  0x88   :  { %v46_v18 = vld [vmem:[#allocation3] sm:$0xff]  ;;  %v47_v19 = vmul.f32 0.00390625, %v45_v17 }
  0x8a   :  { %v48_v20 = vadd.f32 %v47_v19, %v46_v18 }
  0x8c   :  { %76 = vmatpush.msra.mxu0 %v48_v20 }
  0x8d   :  { %164 = vmatmul.msk.f32.vlgmr.msra.gmra.mxu0 %vm57_vm2, %v49_v21 }
 0x10a   :  { %v78_v23 = vpop.f32.mrf.mxu0 }
 0x10b   :  { %v79_v24 = vadd.f32 %v78_v23, %v55_v22 }
 0x10d   :  { %165 = vmatpush.msk.msra.mxu1 %vm93_vm3, %v79_v24 }
 0x10e   :  { %166 = vmatmul.msk.f32.vlgmr.msra.gmra.mxu1 %vm89_vm4, %v81_v25 }
 0x18b   :  { %v114_v28 = vpop.f32.mrf.mxu1 }
 0x18c   :  { %v115_v29 = vadd.f32 %v114_v28, %v87_v27 }
 0x18e   :  { %v167_v30 = vmul.f32 -1.442695, %v115_v29 }
 0x190   :  { %178 = vpow2.f32 %v167_v30 }
 0x196   :  { %v179_v31 = vpop.eup %178 }
 0x197   :  { %v120_v32 = vadd.f32 1.0, %v179_v31 }
 0x199   :  { %180 = vrcp.f32 %v120_v32  ;;  %v132_v36 = vand.u32 2147483648, %v120_v32  ;;  %v130_v38 = vand.u32 2147483647, %v120_v32  ;;  %vm126_vm6 = vweird.f32 %v120_v32 }
 0x19b   :  { %v133_v40 = vor.u32 1.1754944e-38, %v132_v36  ;;  %vm131_vm8 = vcmp.eq.f32.partialorder %v130_v38, 8.507059e+37 }
 0x19f   :  { %v181_v33 = vpop.eup %180 }
 0x1a0   :  { %v122_v34 = vmul.f32 %v181_v33, %v120_v32  ;;  %vm127_vm5 = vweird.f32 %v181_v33 }
 0x1a1   :  { %vm128_vm7 = vmor %vm126_vm6, %vm127_vm5 }
 0x1a2   :  { %v123_v35 = vsub.f32 1.0, %v122_v34 }
 0x1a4   :  { %v124_v37 = vmul.f32 %v181_v33, %v123_v35 }
 0x1a6   :  { %v125_v39 = vadd.f32 %v181_v33, %v124_v37 }
 0x1a8   :  { %v129_v41 = vsel %vm128_vm7, %v181_v33, %v125_v39 }
 0x1a9   :  { %v134_v42 = vsel %vm131_vm8, %v133_v40, %v129_v41 }
 0x1aa   :  { %150 = vperm.xlu1 %176, %v134_v42   ;;  %140 = vperm.xlu0 %175, %v134_v42  }
 0x1b2   :  { %177 = vset.pattern.permute.xlu0 %v183_v26 }
 0x21c   :  { %v151_v43 = vpop.permute.xlu1 %150  ;;  %v141_v44 = vpop.permute.xlu0 %140 }
 0x21d   :  { %v153_v45 = vmul.f32 %v231_v4, %v151_v43  ;;  %v154_v46 = vmul.f32 %v236_v5, %v151_v43  ;;  %v143_v47 = vmul.f32 %v141_v44, %v217_v0  ;;  %v144_v48 = vmul.f32 %v141_v44, %v222_v1 }
 0x21f   :  { %170 = vst [vmem:[%s275_s5 + $0x10] sm:$0xff] %v153_v45 }
 0x220   :  { %171 = vst [vmem:[%s275_s5 + $0x18] sm:$0xff] %v154_v46 }
 0x221   :  { %145 = vst [vmem:[%s275_s5] sm:$0xff] %v143_v47 }
 0x222   :  { %146 = vst [vmem:[%s275_s5 + $0x8] sm:$0xff] %v144_v48 }

</bundles_post_ra>
